<compile_context>
chip_gen: v7x
topology: tpu7x:2x2x1
jax: 0.10.0
libtpu: 0.0.40
codegen_flags: <defaults>
</compile_context>

<pallas_src>
import numpy as np
import jax
import jax.numpy as jnp
from jax.experimental import pallas as pl
from jax.experimental.pallas import tpu as pltpu

# Concrete network implied by BaseNetwork: Linear(IN->HIDDEN) -> tanh -> Linear(HIDDEN->OUT)
IN, HIDDEN, OUT = 16, 32, 4
BATCH = 8

LANES = 128       # TPU lane width: hidden and output dims are zero-padded to this
SUBLANES = 8
MAX_TILE_N = 512  # batch-tile cap (amortizes per-step overhead, still tiny in VMEM)

# Parameter sizes in PyTorch registration order: w1, b1, w2, b2
_PARAM_SHAPES = [(HIDDEN, IN), (HIDDEN,), (OUT, HIDDEN), (OUT,)]
_PARAM_SIZES = [int(np.prod(s)) for s in _PARAM_SHAPES]
NUM_PARAMS = sum(_PARAM_SIZES)

# Packed parameter-tile row layout (every section starts on a sublane boundary).
ROW_W1 = 0                       # w1.T  -> rows [0, IN)           lanes [0, HIDDEN)
ROW_B1 = ROW_W1 + IN             # b1    -> row  ROW_B1            lanes [0, HIDDEN)
ROW_W2 = ROW_B1 + SUBLANES       # w2.T  -> rows [ROW_W2, +LANES)  lanes [0, OUT)
ROW_B2 = ROW_W2 + LANES          # b2    -> row  ROW_B2            lanes [0, OUT)
P_ROWS = ROW_B2 + SUBLANES       # 160 rows x 128 lanes x 4 B = 80 KiB


def _round_up(n, m):
    return ((n + m - 1) // m) * m


# ----------------------------- Pallas kernel --------------------------------

def _mlp_kernel(p_ref, x_ref, y_ref):
    """One batch tile: y = tanh(x @ w1.T + b1) @ w2.T + b2, lane-padded to 128."""
    x = x_ref[...]                                       # (TILE_N, IN)
    w1t = p_ref[ROW_W1:ROW_W1 + IN, :]                   # (IN, 128)   hidden along lanes
    b1 = p_ref[ROW_B1:ROW_B1 + 1, :]                     # (1, 128)
    w2t = p_ref[ROW_W2:ROW_W2 + LANES, :]                # (128, 128)  out along lanes
    b2 = p_ref[ROW_B2:ROW_B2 + 1, :]                     # (1, 128)

    h = jnp.tanh(jnp.dot(x, w1t, preferred_element_type=jnp.float32) + b1)
    y = jnp.dot(h, w2t, preferred_element_type=jnp.float32) + b2
    y_ref[...] = y.astype(y_ref.dtype)                   # lane-dense (TILE_N, 128) store


def mlp_forward_packed(p, x):
    """Forward pass given the packed parameter tile p (P_ROWS, 128) and x (N, IN)."""
    n = x.shape[0]
    tile_n = min(MAX_TILE_N, _round_up(n, SUBLANES))
    n_pad = _round_up(n, tile_n)
    if n_pad != n:
        x = jnp.pad(x, ((0, n_pad - n), (0, 0)))

    y_pad = pl.pallas_call(
        _mlp_kernel,
        out_shape=jax.ShapeDtypeStruct((n_pad, LANES), jnp.float32),
        grid=(n_pad // tile_n,),
        in_specs=[
            # Packed parameters: same block every step -> resident in VMEM, one DMA.
            pl.BlockSpec((P_ROWS, LANES), lambda i: (0, 0)),
            # Batch-streamed input tile.
            pl.BlockSpec((tile_n, IN), lambda i: (i, 0)),
        ],
        out_specs=pl.BlockSpec((tile_n, LANES), lambda i: (i, 0)),
        compiler_params=pltpu.CompilerParams(dimension_semantics=("parallel",)),
    )(p, x)

    return y_pad[:n, :OUT]


# ------------------- BaseNetwork parameter-vector machinery ------------------

def flatten_params(w1, b1, w2, b2):
    """BaseNetwork.params: concatenated row-major views, shape (d, 1)."""
    flat = jnp.concatenate(
        [w1.reshape(-1), b1.reshape(-1), w2.reshape(-1), b2.reshape(-1)])
    return flat[:, None]


def unflatten_params(u):
    """BaseNetwork.params setter: squeeze u, slice per parameter, reshape."""
    u = u.reshape(-1)
    out, off = [], 0
    for shape, size in zip(_PARAM_SHAPES, _PARAM_SIZES):
        out.append(u[off:off + size].reshape(shape))
        off += size
    return tuple(out)


def pack_params(u):
    """Unflatten u and pack all parameters into one lane-dense (P_ROWS, 128) tile.

    Weights are pre-transposed (w1 -> (IN, HIDDEN), w2 -> (HIDDEN, OUT)) and the
    hidden/out dims are zero-padded to 128 lanes, so the kernel's matmuls are in
    native (M,K)x(K,N) form and the output store is lane-dense.  Zero padding of
    the unused hidden lanes keeps the second matmul exact.
    """
    w1, b1, w2, b2 = unflatten_params(u)
    p = jnp.zeros((P_ROWS, LANES), jnp.float32)
    p = p.at[ROW_W1:ROW_W1 + IN, :HIDDEN].set(w1.T)
    p = p.at[ROW_B1, :HIDDEN].set(b1)
    p = p.at[ROW_W2:ROW_W2 + HIDDEN, :OUT].set(w2.T)
    p = p.at[ROW_B2, :OUT].set(b2)
    return p


@jax.jit
def f(u, x):
    """BaseNetwork.f(u, x): evaluate forward(x) under flattened parameters u.

    The unflatten/pack/pad/slice glue is traced in the same jit as the single
    pallas_call, so the whole thing is one fused launch.
    """
    return mlp_forward_packed(pack_params(u), x)


# TODO(synk): BaseNetwork.Jacobian builds a (c*n, d) Jacobian via per-output
# torch backward() loops; the JAX equivalent is jax.jacrev(f)(u, x) on this
# wrapper (differentiating through the same batched kernel), not an in-kernel
# construct, so it is left outside the Pallas kernel.


if __name__ == "__main__":
    key = jax.random.PRNGKey(0)
    kx, kw1, kb1, kw2, kb2 = jax.random.split(key, 5)

    x = jax.random.normal(kx, (BATCH, IN), dtype=jnp.float32)
    w1 = 0.1 * jax.random.normal(kw1, (HIDDEN, IN), dtype=jnp.float32)
    b1 = 0.1 * jax.random.normal(kb1, (HIDDEN,), dtype=jnp.float32)
    w2 = 0.1 * jax.random.normal(kw2, (OUT, HIDDEN), dtype=jnp.float32)
    b2 = 0.1 * jax.random.normal(kb2, (OUT,), dtype=jnp.float32)

    u = flatten_params(w1, b1, w2, b2)            # (d, 1), d == NUM_PARAMS
    assert u.shape == (NUM_PARAMS, 1)

    y = jax.block_until_ready(f(u, x))            # (BATCH, OUT)

    # Reference check in plain jnp (torch.nn.Linear semantics).
    h_ref = jnp.tanh(x @ w1.T + b1)
    y_ref = h_ref @ w2.T + b2
    np.testing.assert_allclose(np.asarray(y), np.asarray(y_ref),
                               rtol=1e-5, atol=1e-5)

    # Batch-padding path (N not a multiple of the sublane count).
    x2 = jax.random.normal(jax.random.PRNGKey(1), (BATCH + 2, IN), dtype=jnp.float32)
    y2 = jax.block_until_ready(f(u, x2))
    y2_ref = jnp.tanh(x2 @ w1.T + b1) @ w2.T + b2
    np.testing.assert_allclose(np.asarray(y2), np.asarray(y2_ref),
                               rtol=1e-5, atol=1e-5)

    # Multi-tile grid path (batch larger than one tile, non-divisible).
    x3 = jax.random.normal(jax.random.PRNGKey(2), (MAX_TILE_N * 2 + 13, IN),
                           dtype=jnp.float32)
    y3 = jax.block_until_ready(f(u, x3))
    y3_ref = jnp.tanh(x3 @ w1.T + b1) @ w2.T + b2
    np.testing.assert_allclose(np.asarray(y3), np.asarray(y3_ref),
                               rtol=1e-5, atol=1e-5)

    print("KERNEL_OK")
</pallas_src>

<mosaic_0001>
module attributes {stable_mosaic.version = 11 : i64} {
  func.func @_mlp_kernel(%arg0: i32, %arg1: memref<160x128xf32, #tpu.memory_space<vmem>>, %arg2: memref<8x16xf32, #tpu.memory_space<vmem>>, %arg3: memref<8x128xf32, #tpu.memory_space<vmem>>) attributes {dimension_semantics = [#tpu.dimension_semantics<parallel>], iteration_bounds = array<i64: 1>, scalar_prefetch = 0 : i64, scratch_operands = 0 : i64, tpu.core_type = #tpu.core_type<tc>, window_params = [{pipeline_mode = #tpu.pipeline_mode<synchronous>, transform_indices = @transform_0, window_bounds = array<i64: 160, 128>}, {transform_indices = @transform_1, window_bounds = array<i64: 8, 16>}, {transform_indices = @transform_2, window_bounds = array<i64: 8, 128>}]} {
    %c0 = arith.constant 0 : index
    %c0_0 = arith.constant 0 : index
    %0 = vector.load %arg2[%c0, %c0_0] : memref<8x16xf32, #tpu.memory_space<vmem>>, vector<8x16xf32>
    %c0_1 = arith.constant 0 : index
    %c0_2 = arith.constant 0 : index
    %1 = vector.load %arg1[%c0_1, %c0_2] : memref<160x128xf32, #tpu.memory_space<vmem>>, vector<16x128xf32>
    %c16 = arith.constant 16 : index
    %c0_3 = arith.constant 0 : index
    %2 = vector.load %arg1[%c16, %c0_3] : memref<160x128xf32, #tpu.memory_space<vmem>>, vector<1x128xf32>
    %c24 = arith.constant 24 : index
    %c0_4 = arith.constant 0 : index
    %3 = vector.load %arg1[%c24, %c0_4] : memref<160x128xf32, #tpu.memory_space<vmem>>, vector<128x128xf32>
    %c152 = arith.constant 152 : index
    %c0_5 = arith.constant 0 : index
    %4 = vector.load %arg1[%c152, %c0_5] : memref<160x128xf32, #tpu.memory_space<vmem>>, vector<1x128xf32>
    %cst = arith.constant dense<0.000000e+00> : vector<8x128xf32>
    %5 = tpu.matmul %0, %1, %cst {dimension_numbers = #tpu.dot_dimension_numbers<[1], [0], [0], [1], [0, 0, 1, 1], [], []>} : vector<8x16xf32>, vector<16x128xf32>, vector<8x128xf32> -> vector<8x128xf32>
    %6 = vector.broadcast %2 : vector<1x128xf32> to vector<8x128xf32>
    %7 = arith.addf %5, %6 : vector<8x128xf32>
    %8 = math.tanh %7 : vector<8x128xf32>
    %cst_6 = arith.constant dense<0.000000e+00> : vector<8x128xf32>
    %9 = tpu.matmul %8, %3, %cst_6 {dimension_numbers = #tpu.dot_dimension_numbers<[1], [0], [0], [1], [0, 0, 1, 1], [], []>} : vector<8x128xf32>, vector<128x128xf32>, vector<8x128xf32> -> vector<8x128xf32>
    %10 = vector.broadcast %4 : vector<1x128xf32> to vector<8x128xf32>
    %11 = arith.addf %9, %10 : vector<8x128xf32>
    %c0_7 = arith.constant 0 : index
    %c0_8 = arith.constant 0 : index
    %12 = vector.load %arg3[%c0_7, %c0_8] : memref<8x128xf32, #tpu.memory_space<vmem>>, vector<8x128xf32>
    tpu.vector_store %arg3[%c0_7, %c0_8], %11 {strides = array<i32>} : memref<8x128xf32, #tpu.memory_space<vmem>>, vector<8x128xf32>,
    return
  }
  func.func @transform_0(%arg0: i32) -> (i32, i32) {
    %c0_i32 = arith.constant 0 : i32
    %c0_i32_0 = arith.constant 0 : i32
    %c0_i32_1 = arith.constant 0 : i32
    return %c0_i32, %c0_i32_0 : i32, i32
  }
  func.func @transform_1(%arg0: i32) -> (i32, i32) {
    %c0_i32 = arith.constant 0 : i32
    %c0_i32_0 = arith.constant 0 : i32
    return %arg0, %c0_i32 : i32, i32
  }
  func.func @transform_2(%arg0: i32) -> (i32, i32) {
    %c0_i32 = arith.constant 0 : i32
    %c0_i32_0 = arith.constant 0 : i32
    return %arg0, %c0_i32 : i32, i32
  }
}

</mosaic_0001>

<bundles_post_ra>
// kernel: f.1
= control target key start
LH: loop header
LB: loop body
LE: loop exit
PB: predicated region body
PF: predicated region fallthrough
CT: control target
= control target key end

     0   :  { %v287_v0 = vmov 0.0|0.0   ;;  %vm288_vm0 = vmmov 0   ;;  %v289_v3 = vmov 0.0   ;;  %vm36_vm1 = vcmask 130048   ;;  %s371_s0 = inlined_call_operand.vmem [shape: f32[160,128], index: 0, kind: input, shape index: {}]   ;;  %s372_s1 = inlined_call_operand.vmem [shape: f32[8,16], index: 1, kind: input, shape index: {}]   ;;  %s373_s2 = inlined_call_operand.vmem [shape: f32[8,128], index: 2, kind: output, shape index: {}]  }
   0x1   :  { %255 = vmatprep.subr.bf16.mxu0 %v287_v0  ;;  %v12_v1 = vld [vmem:[%s371_s0] sm:$0xff]  ;;  %v13_v2 = vld [vmem:[%s371_s0 + $0x8] sm:$0xff]  ;;  %217 = vmatprep.mubr.msk.f32.mxu0 %vm288_vm0, %v289_v3  ;;  %v15_v5 = vld [vmem:[%s371_s0 + $0x18] sm:$0xff] }
   0x2   :  { %v256_v4 = vpack.c.bf16 %v13_v2, %v12_v1  ;;  %258 = vmatprep.subr.bf16.mxu1 %v287_v0  ;;  %v16_v6 = vld [vmem:[%s371_s0 + $0x20] sm:$0xff]  ;;  %v17_v7 = vld [vmem:[%s371_s0 + $0x28] sm:$0xff]  ;;  %252 = vmatprep.mubr.msk.f32.mxu1 %vm288_vm0, %v289_v3  ;;  %v18_v9 = vld [vmem:[%s371_s0 + $0x30] sm:$0xff] }
   0x3   :  { %v259_v8 = vpack.c.bf16 %v16_v6, %v15_v5  ;;  %v11_v10 = vld [vmem:[%s372_s1] sm:$0xff]  ;;  %v262_v11 = vpack.c.bf16 %v18_v9, %v17_v7  ;;  %v19_v12 = vld [vmem:[%s371_s0 + $0x38] sm:$0xff]  ;;  %v21_v15 = vld [vmem:[%s371_s0 + $0x48] sm:$0xff] }
   0x4   :  { %257 = vmatpush3.bf16.msra.mxu0 %v256_v4  ;;  %v20_v13 = vld [vmem:[%s371_s0 + $0x40] sm:$0xff]  ;;  %v22_v16 = vld [vmem:[%s371_s0 + $0x50] sm:$0xff]  ;;  %v23_v18 = vld [vmem:[%s371_s0 + $0x58] sm:$0xff] }
   0x5   :  { %260 = vmatpush3.bf16.msra.mxu1 %v259_v8  ;;  %v265_v14 = vpack.c.bf16 %v20_v13, %v19_v12  ;;  %v268_v17 = vpack.c.bf16 %v22_v16, %v21_v15  ;;  %v24_v19 = vld [vmem:[%s371_s0 + $0x60] sm:$0xff]  ;;  %v25_v21 = vld [vmem:[%s371_s0 + $0x68] sm:$0xff]  ;;  %v26_v22 = vld [vmem:[%s371_s0 + $0x70] sm:$0xff] }
   0x6   :  { %261 = vmatprep.subr.bf16.mxu1 %v287_v0  ;;  %v271_v20 = vpack.c.bf16 %v24_v19, %v23_v18  ;;  %v274_v23 = vpack.c.bf16 %v26_v22, %v25_v21  ;;  %v27_v24 = vld [vmem:[%s371_s0 + $0x78] sm:$0xff]  ;;  %v28_v25 = vld [vmem:[%s371_s0 + $0x80] sm:$0xff]  ;;  %v29_v27 = vld [vmem:[%s371_s0 + $0x88] sm:$0xff] }
   0x7   :  { %218 = vmatmul.mubr.msk.f32.vlgmr.msra.gmra.mrb[0].mxu0 %vm36_vm1, %v11_v10  ;;  %v277_v26 = vpack.c.bf16 %v28_v25, %v27_v24  ;;  %v30_v28 = vld [vmem:[%s371_s0 + $0x90] sm:$0xff]  ;;  %v192_v35 = vld [vmem:[%s371_s0 + $0x98] ss:$0 sm:$0xff] }
   0x8   :  { %v280_v29 = vpack.c.bf16 %v30_v28, %v29_v27  ;;  %v190_v30 = vld [vmem:[%s371_s0 + $0x10] ss:$0 sm:$0xff] }
   0x9   :  { %263 = vmatpush3.bf16.msra.mxu1 %v262_v11 }
   0xa   :  { %264 = vmatprep.subr.bf16.mxu1 %v287_v0 }
   0xd   :  { %266 = vmatpush3.bf16.msra.mxu1 %v265_v14 }
   0xe   :  { %267 = vmatprep.subr.bf16.mxu1 %v287_v0 }
  0x11   :  { %269 = vmatpush3.bf16.msra.mxu1 %v268_v17 }
  0x12   :  { %270 = vmatprep.subr.bf16.mxu1 %v287_v0 }
  0x15   :  { %272 = vmatpush3.bf16.msra.mxu1 %v271_v20 }
  0x16   :  { %273 = vmatprep.subr.bf16.mxu1 %v287_v0 }
  0x19   :  { %275 = vmatpush3.bf16.msra.mxu1 %v274_v23 }
  0x1a   :  { %276 = vmatprep.subr.bf16.mxu1 %v287_v0 }
  0x1d   :  { %278 = vmatpush3.bf16.msra.mxu1 %v277_v26 }
  0x1e   :  { %279 = vmatprep.subr.bf16.mxu1 %v287_v0 }
  0x21   :  { %281 = vmatpush3.bf16.msra.mxu1 %v280_v29 }
  0xda   :  { %v106_v31 = vpop.f32.mrb[0].mxu0 }
  0xdb   :  { %v107_v32 = vadd.f32 %v190_v30, %v106_v31  ;;  %v219_v33 = vpop.f32.mrb[1].mxu0 }
  0xdd   :  { %285 = vtanh.f32 %v107_v32 }
  0xe7   :  { %v286_v34 = vpop.eup %285 }
  0xe8   :  { %253 = vmatmul.mubr.f32.vlgmr.msra.gmra.mrb[0].mxu1 %v286_v34 }
 0x1bb   :  { %v181_v36 = vpop.f32.mrb[0].mxu1 }
 0x1bc   :  { %v182_v37 = vadd.f32 %v192_v35, %v181_v36  ;;  %v254_v38 = vpop.f32.mrb[1].mxu1 }
 0x1be   :  { %185 = vst [vmem:[%s373_s2] sm:$0xff] %v182_v37 }

</bundles_post_ra>
